<compile_context>
chip_gen: v5e
topology: v5e:2x2
jax: 0.10.0
libtpu: 0.0.40
codegen_flags: <defaults>
</compile_context>

<pallas_src>
import jax
import jax.numpy as jnp
from jax.experimental import pallas as pl
from jax.experimental.pallas import tpu as pltpu


def _linear_proj_kernel(eta_ref, v_ref, y_ref, phi_ref, phisum_ref, o_ref):
    # eta_ref: (1,) scalar in SMEM.
    # 4-D path tiles: v/phi/o (1, C, Rt, 128); y/phisum (1, 1, Rt, 128).
    # 3-D path tiles: v/phi/o (1, C, T);       y/phisum (1, 1, T).
    eta = eta_ref[0]
    v = v_ref[...]
    phi = phi_ref[...]

    # A_operator: channel reduction with keepdim (channel axis is axis=1 in
    # both layouts; on the 4-D path it is a leading dim -> pure VPU adds).
    yb = jnp.sum(phi * v, axis=1, keepdims=True)

    # Exact divide (kernel is HBM-bound; the divide hides behind the DMA).
    o_ref[...] = v + ((y_ref[...] - yb) / (phisum_ref[...] + eta)) * phi


def _round_up(x, m):
    return -(-x // m) * m


def _choose_row_tile(R, C, budget_bytes=8 * 1024 * 1024):
    """Row tile (rows of 128 lanes) for the dense 4-D (B, C, R, 128) layout.

    Per-tile footprint (f32, double-buffered, all 6 pipelined operands):
        2 * (3*C + 2) * r_tile * 128 * 4 bytes
    No sublane padding: lanes = 128, sublanes = r_tile, C is a leading dim.
    """
    per_row = 2 * (3 * C + 2) * 128 * 4
    cap = max(8, (budget_bytes // per_row) // 8 * 8)
    if R > 8:
        # Keep at least 2 spatial programs: dual-TC sharding + pipeline overlap.
        cap = min(cap, max(8, _round_up(pl.cdiv(R, 2), 8)))
    return R if cap >= R else cap


def _choose_lane_tile(HW, C, budget_bytes=8 * 1024 * 1024):
    """Lane tile for the 3-D fallback layout (HW not a multiple of 128).

    Counts padded sublanes: C pads to ceil(C/8)*8 for v/phi/out, 1 -> 8 for
    y/phisum. No divisor search; last block may be ragged (pl.cdiv grid).
    """
    cpad = _round_up(C, 8)
    per_lane = 2 * (3 * cpad + 2 * 8) * 4
    cap = max(128, (budget_bytes // per_lane) // 128 * 128)
    return HW if cap >= HW else cap


def linear_proj(v, y, phi, phisum, eta_step, *, donate_v=False):
    """Pallas implementation of LinearProj.forward.

    Args (float32, NCHW like PyTorch):
      v:      (B, C, H, W)
      y:      (B, 1, H, W)
      phi:    (B, C, H, W)
      phisum: (B, 1, H, W)
      eta_step: scalar parameter, shape (1,)
      donate_v: alias v's buffer to the output (caller must donate v).
    Returns:
      (B, C, H, W), same dtype as v.
    """
    B, C, H, W = v.shape
    HW = H * W
    eta = jnp.asarray(eta_step, dtype=v.dtype).reshape((1,))

    params = pltpu.CompilerParams(
        dimension_semantics=("parallel", "parallel"),
        vmem_limit_bytes=32 * 1024 * 1024)
    io_alias = {1: 0} if donate_v else {}

    if HW % 128 == 0:
        # Main path: dense (rows, 128) spatial tail, channel as a leading dim.
        R = HW // 128
        rt = _choose_row_tile(R, C)
        grid = (B, pl.cdiv(R, rt))
        blk = lambda b, s: (b, 0, s, 0)

        out = pl.pallas_call(
            _linear_proj_kernel,
            out_shape=jax.ShapeDtypeStruct((B, C, R, 128), v.dtype),
            grid=grid,
            in_specs=[
                pl.BlockSpec(memory_space=pltpu.SMEM),        # eta_step scalar
                pl.BlockSpec((1, C, rt, 128), blk),           # v
                pl.BlockSpec((1, 1, rt, 128), blk),           # y
                pl.BlockSpec((1, C, rt, 128), blk),           # Phi
                pl.BlockSpec((1, 1, rt, 128), blk),           # Phisum
            ],
            out_specs=pl.BlockSpec((1, C, rt, 128), blk),
            compiler_params=params,
            input_output_aliases=io_alias,
        )(eta,
          v.reshape(B, C, R, 128), y.reshape(B, 1, R, 128),
          phi.reshape(B, C, R, 128), phisum.reshape(B, 1, R, 128))
        return out.reshape(B, C, H, W)

    # Fallback path: HW not lane-aligned -> 3-D layout, clamped 128-multiple
    # tile, ragged last block via pl.cdiv (safe: reduction is over C only).
    t = _choose_lane_tile(HW, C)
    grid = (B, pl.cdiv(HW, t))
    blk = lambda b, s: (b, 0, s)

    out = pl.pallas_call(
        _linear_proj_kernel,
        out_shape=jax.ShapeDtypeStruct((B, C, HW), v.dtype),
        grid=grid,
        in_specs=[
            pl.BlockSpec(memory_space=pltpu.SMEM),            # eta_step scalar
            pl.BlockSpec((1, C, t), blk),                     # v
            pl.BlockSpec((1, 1, t), blk),                     # y
            pl.BlockSpec((1, C, t), blk),                     # Phi
            pl.BlockSpec((1, 1, t), blk),                     # Phisum
        ],
        out_specs=pl.BlockSpec((1, C, t), blk),
        compiler_params=params,
        input_output_aliases=io_alias,
    )(eta,
      v.reshape(B, C, HW), y.reshape(B, 1, HW),
      phi.reshape(B, C, HW), phisum.reshape(B, 1, HW))
    return out.reshape(B, C, H, W)


def _reference(v, y, phi, phisum, eta_step):
    yb = jnp.sum(phi * v, axis=1, keepdims=True)
    return v + ((y - yb) / (phisum + eta_step)) * phi


if __name__ == "__main__":
    key = jax.random.PRNGKey(0)
    kv, ky, kp = jax.random.split(key, 3)

    B, C, H, W = 2, 4, 16, 16

    v = jax.random.normal(kv, (B, C, H, W), dtype=jnp.float32)
    phi = jax.random.uniform(kp, (B, C, H, W), dtype=jnp.float32)
    y = jax.random.normal(ky, (B, 1, H, W), dtype=jnp.float32)
    phisum = jnp.sum(phi, axis=1, keepdims=True) + 1.0  # well-conditioned denom

    # nn.Parameter(torch.Tensor([0.01])) -> deterministic init 0.01
    eta_step = jnp.array([0.01], dtype=jnp.float32)

    out = jax.block_until_ready(linear_proj(v, y, phi, phisum, eta_step))
    ref = _reference(v, y, phi, phisum, eta_step)

    assert out.shape == (B, C, H, W)
    assert jnp.allclose(out, ref, atol=1e-5, rtol=1e-5), "mismatch vs reference"

    print("KERNEL_OK")
</pallas_src>

<mosaic_0001>
module attributes {stable_mosaic.version = 11 : i64} {
  func.func @_linear_proj_kernel(%arg0: i32, %arg1: i32, %arg2: memref<1xf32, #tpu.memory_space<smem>>, %arg3: memref<1x4x2x128xf32, #tpu.memory_space<vmem>>, %arg4: memref<1x1x2x128xf32, #tpu.memory_space<vmem>>, %arg5: memref<1x4x2x128xf32, #tpu.memory_space<vmem>>, %arg6: memref<1x1x2x128xf32, #tpu.memory_space<vmem>>, %arg7: memref<1x4x2x128xf32, #tpu.memory_space<vmem>>) attributes {dimension_semantics = [#tpu.dimension_semantics<parallel>, #tpu.dimension_semantics<parallel>], iteration_bounds = array<i64: 2, 1>, scalar_prefetch = 0 : i64, scratch_operands = 0 : i64, tpu.core_type = #tpu.core_type<tc>, window_params = [{transform_indices = @transform_0, window_bounds = array<i64: 1>}, {transform_indices = @transform_1, window_bounds = array<i64: 1, 4, 2, 128>}, {transform_indices = @transform_2, window_bounds = array<i64: 1, 1, 2, 128>}, {transform_indices = @transform_3, window_bounds = array<i64: 1, 4, 2, 128>}, {transform_indices = @transform_4, window_bounds = array<i64: 1, 1, 2, 128>}, {transform_indices = @transform_5, window_bounds = array<i64: 1, 4, 2, 128>}]} {
    %c0 = arith.constant 0 : index
    %0 = memref.load %arg2[%c0] : memref<1xf32, #tpu.memory_space<smem>>
    %c0_0 = arith.constant 0 : index
    %c0_1 = arith.constant 0 : index
    %c0_2 = arith.constant 0 : index
    %c0_3 = arith.constant 0 : index
    %1 = vector.load %arg3[%c0_0, %c0_1, %c0_2, %c0_3] : memref<1x4x2x128xf32, #tpu.memory_space<vmem>>, vector<1x4x2x128xf32>
    %c0_4 = arith.constant 0 : index
    %c0_5 = arith.constant 0 : index
    %c0_6 = arith.constant 0 : index
    %c0_7 = arith.constant 0 : index
    %2 = vector.load %arg5[%c0_4, %c0_5, %c0_6, %c0_7] : memref<1x4x2x128xf32, #tpu.memory_space<vmem>>, vector<1x4x2x128xf32>
    %3 = arith.mulf %2, %1 : vector<1x4x2x128xf32>
    %cst = arith.constant dense<0.000000e+00> : vector<1x2x128xf32>
    %4 = vector.multi_reduction <add>, %3, %cst [1] : vector<1x4x2x128xf32> to vector<1x2x128xf32>
    %5 = vector.shape_cast %4 : vector<1x2x128xf32> to vector<1x1x2x128xf32>
    %c0_8 = arith.constant 0 : index
    %c0_9 = arith.constant 0 : index
    %c0_10 = arith.constant 0 : index
    %c0_11 = arith.constant 0 : index
    %6 = vector.load %arg4[%c0_8, %c0_9, %c0_10, %c0_11] : memref<1x1x2x128xf32, #tpu.memory_space<vmem>>, vector<1x1x2x128xf32>
    %7 = arith.subf %6, %5 : vector<1x1x2x128xf32>
    %c0_12 = arith.constant 0 : index
    %c0_13 = arith.constant 0 : index
    %c0_14 = arith.constant 0 : index
    %c0_15 = arith.constant 0 : index
    %8 = vector.load %arg6[%c0_12, %c0_13, %c0_14, %c0_15] : memref<1x1x2x128xf32, #tpu.memory_space<vmem>>, vector<1x1x2x128xf32>
    %9 = vector.broadcast %0 : f32 to vector<1x1x2x128xf32>
    %10 = arith.addf %8, %9 : vector<1x1x2x128xf32>
    %11 = arith.divf %7, %10 : vector<1x1x2x128xf32>
    %12 = vector.broadcast %11 : vector<1x1x2x128xf32> to vector<1x4x2x128xf32>
    %13 = arith.mulf %12, %2 : vector<1x4x2x128xf32>
    %14 = arith.addf %1, %13 : vector<1x4x2x128xf32>
    %c0_16 = arith.constant 0 : index
    %c0_17 = arith.constant 0 : index
    %c0_18 = arith.constant 0 : index
    %c0_19 = arith.constant 0 : index
    %15 = vector.load %arg7[%c0_16, %c0_17, %c0_18, %c0_19] : memref<1x4x2x128xf32, #tpu.memory_space<vmem>>, vector<1x4x2x128xf32>
    tpu.vector_store %arg7[%c0_16, %c0_17, %c0_18, %c0_19], %14 {strides = array<i32>} : memref<1x4x2x128xf32, #tpu.memory_space<vmem>>, vector<1x4x2x128xf32>,
    return
  }
  func.func @transform_0(%arg0: i32, %arg1: i32) -> i32 {
    %c0_i32 = arith.constant 0 : i32
    %c0_i32_0 = arith.constant 0 : i32
    return %c0_i32 : i32
  }
  func.func @transform_1(%arg0: i32, %arg1: i32) -> (i32, i32, i32, i32) {
    %c0_i32 = arith.constant 0 : i32
    %c0_i32_0 = arith.constant 0 : i32
    %c0_i32_1 = arith.constant 0 : i32
    return %arg0, %c0_i32, %arg1, %c0_i32_0 : i32, i32, i32, i32
  }
  func.func @transform_2(%arg0: i32, %arg1: i32) -> (i32, i32, i32, i32) {
    %c0_i32 = arith.constant 0 : i32
    %c0_i32_0 = arith.constant 0 : i32
    %c0_i32_1 = arith.constant 0 : i32
    return %arg0, %c0_i32, %arg1, %c0_i32_0 : i32, i32, i32, i32
  }
  func.func @transform_3(%arg0: i32, %arg1: i32) -> (i32, i32, i32, i32) {
    %c0_i32 = arith.constant 0 : i32
    %c0_i32_0 = arith.constant 0 : i32
    %c0_i32_1 = arith.constant 0 : i32
    return %arg0, %c0_i32, %arg1, %c0_i32_0 : i32, i32, i32, i32
  }
  func.func @transform_4(%arg0: i32, %arg1: i32) -> (i32, i32, i32, i32) {
    %c0_i32 = arith.constant 0 : i32
    %c0_i32_0 = arith.constant 0 : i32
    %c0_i32_1 = arith.constant 0 : i32
    return %arg0, %c0_i32, %arg1, %c0_i32_0 : i32, i32, i32, i32
  }
  func.func @transform_5(%arg0: i32, %arg1: i32) -> (i32, i32, i32, i32) {
    %c0_i32 = arith.constant 0 : i32
    %c0_i32_0 = arith.constant 0 : i32
    %c0_i32_1 = arith.constant 0 : i32
    return %arg0, %c0_i32, %arg1, %c0_i32_0 : i32, i32, i32, i32
  }
}

</mosaic_0001>

<bundles_post_ra>
// kernel: tpu_custom_call.1
= control target key start
LH: loop header
LB: loop body
LE: loop exit
PB: predicated region body
PF: predicated region fallthrough
CT: control target
= control target key end

     0   :  { %s1086_s0 = inlined_call_operand.<no memory space> [shape: f32[1], index: 0, kind: input, shape index: {}]   ;;  %s1087_s1 = inlined_call_operand.hbm [shape: f32[2,4,2,128], index: 1, kind: input, shape index: {}]   ;;  %s1088_s2 = inlined_call_operand.hbm [shape: f32[2,1,2,128], index: 2, kind: input, shape index: {}]   ;;  %s1089_s3 = inlined_call_operand.hbm [shape: f32[2,4,2,128], index: 3, kind: input, shape index: {}]   ;;  %s1090_s4 = inlined_call_operand.vmem [shape: f32[2,1,2,128], index: 4, kind: input, shape index: {}]   ;;  %s1091_s5 = inlined_call_operand.hbm [shape: f32[2,4,2,128], index: 5, kind: output, shape index: {}]  }
   0x1   :  { %1097 = sst [smem:[#allocation18_spill]] %s1088_s2 }
   0x2   :  { %10 = sst [smem:[#allocation2]] %s1086_s0 }
   0x3   :  { %11 = vsyncpa [#allocation4], 0 }
   0x4   :  { %13 = vsyncpa [#allocation4 + $0x1], 0 }
   0x5   :  { %14 = vsyncpa [#allocation7], 0 }
   0x6   :  { %16 = vsyncpa [#allocation7 + $0x1], 0 }
   0x7   :  { %17 = vsyncpa [#allocation5], 0 }
   0x8   :  { %19 = vsyncpa [#allocation5 + $0x1], 0  ;;  %s910_s20 = smov 0   ;;  %s912_s21 = smov 0  }
   0x9   :  { %s914_s22 = smov 0   ;;  %s916_s23 = smov 0  }
   0xa   :  { %s918_s24 = smov 0   ;;  %s920_s25 = smov 0  }
   0xb LB: > { %1098 = sst [smem:[#allocation13_spill]] %s859_s22  ;;  %s941_s0 = sadd.s32 4294967295, %s871_s25   ;;  %s871_s25 = sphi %s920_s25, %s25_s25   ;;  %s867_s24 = sphi %s918_s24, %s1118_s24   ;;  %s863_s23 = sphi %s916_s23, %s1117_s23   ;;  %s859_s22 = sphi %s914_s22, %s1113_s22   ;;  %s855_s21 = sphi %s912_s21, %s1116_s21   ;;  %s851_s20 = sphi %s910_s20, %s1115_s20  }
   0xc   : > { %1099 = sst [smem:[#allocation14_spill]] %s871_s25  ;;  %s592_s26 = sadd.s32 4294967294, %s871_s25  }
   0xd   : > { %s37_s27 = sadd.s32 1, %s867_s24  ;;  %s67_s28 = sadd.s32 1, %s859_s22 }
   0xe   : > { %p39_p0 = scmp.ge.s32.totalorder %s37_s27, 2  ;;  %p74_p1 = scmp.ne.s32.totalorder %s859_s22, %s855_s21 }
   0xf   : > { %p75_p2 = scmp.eq.s32.totalorder %s871_s25, 0  ;;  %p80_p3 = scmp.ne.s32.totalorder %s855_s21, %s851_s20 }
  0x10   : > { %s1120_s27 = smov (%p39_p0, %s37_s27), 0  ;;  %p81_p5 = scmp.eq.s32.totalorder %s941_s0, 0 }
  0x11   : > { %1100 = sst [smem:[#allocation15_spill]] %s1120_s27  ;;  %p953_p4 = por %p75_p2, %p74_p1 }
  0x12   : > { %s62_s30 = ssub.s32 %s867_s24, %s1120_s27  ;;  %p190_p6 = scmp.eq.s32.totalorder %s941_s0, 1 }
  0x13   : > { %p65_p7 = scmp.eq.s32.totalorder %s62_s30, 0  ;;  %p961_p8 = por %p81_p5, %p80_p3 }
  0x14   : > { %p965_p9 = por %p190_p6, %p74_p1  ;;  %p196_p10 = scmp.eq.s32.totalorder %s592_s26, 1 }
  0x15   : > { %s970_s8 = scalar_select %p65_p7, %s859_s22, %s67_s28  }
  0x16   : > { %p972_p11 = por %p196_p10, %p80_p3  ;;  %p594_p12 = scmp.ge.s32.totalorder %s871_s25, 2 }
  0x17   : > { %1104 = sst [smem:[#allocation16_spill]] %s970_s8  ;;  %p639_p13 = scmp.lt.s32.totalorder %s871_s25, 2 }
  0x18   : > { %s1105_s9 = scalar_select %p972_p11, 1, 0 }
  0x19   : > { %s979_s10 = sand.u32 1, %s859_s22   ;;  %s242_s12 = sand.u32 1, %s871_s25  }
  0x1a   : > { %1106 = sst [smem:[#allocation17_spill]] %s1105_s9  ;;  %s595_s11 = sshll.u32 %s979_s10, 3 }
  0x1b   : > { %p985_p0 = pnand %p639_p13, %p953_p4  ;;  %s598_s14 = sshll.u32 %s979_s10, 1 }
  0x1c   : > { %s599_s15 = sshll.u32 %s867_s24, 1  ;;  %s1108_s2 = sld [smem:[#allocation18_spill]] }
  0x1d   : > { %s246_s19 = scalar_lea.vmem [#allocation6], %s598_s14  ;;  %s243_s30 = scalar_lea.sflag [#allocation7], %s242_s12 }
  0x1e   : > { %s255_s26 = sshll.u32 %s246_s19, 4  ;;  %s266_s29 = scalar_lea.vmem [#allocation8], %s595_s11  ;;  %s256_s26 = int_to_ptr.vmem [resolvable:$true] %s255_s26 }
  0x1f   : > { %s275_s27 = sshll.u32 %s266_s29, 4  ;;  %p603_p1 = scmp.ge.s32.totalorder %s871_s25, 1  ;;  %s276_s27 = int_to_ptr.vmem [resolvable:$true] %s275_s27 }
  0x20   : > { %p293_p2 = scmp.lt.s32.totalorder %s871_s25, 3  ;;  %s614_s14 = sshll.u32 %s867_s24, 3 }
  0x21   : > { %s229_s17 = scalar_lea.hbm %s1087_s1, %s614_s14  ;;  %s223_s12 = scalar_lea.vmem [#allocation3], %s595_s11 }
  0x22   : > { %s251_s18 = scalar_lea.hbm %s1108_s2, %s599_s15  ;;  %p998_p3 = pnand %p603_p1, %p293_p2 }
  0x23   : > { %s253_s28 = sshll.u32 %s251_s18, 4  ;;  %s232_s18 = sshll.u32 %s223_s12, 4  ;;  %s254_s28 = int_to_ptr.hbm [resolvable:$true] %s253_s28  ;;  %s233_s18 = int_to_ptr.vmem [resolvable:$true] %s232_s18 }
  0x24   : > { %631 = dma.hbm_to_vmem [thread:$0]  (!%p985_p0), %s254_s28, 32, %s256_s26, %s243_s30  }
  0x25   : > { %s230_s19 = sshll.u32 %s229_s17, 4  ;;  %s272_s29 = scalar_lea.hbm %s1089_s3, %s614_s14  ;;  %s231_s19 = int_to_ptr.hbm [resolvable:$true] %s230_s19 }
  0x26   : > { %s220_s2 = scalar_lea.sflag [#allocation4], %s979_s10  ;;  %s873_s22 = smov 32  }
  0x27   : > { %s874_s25 = smov 2   ;;  %s273_s9 = sshll.u32 %s272_s29, 4  ;;  %s274_s9 = int_to_ptr.hbm [resolvable:$true] %s273_s9 }
  0x28   : > { %628 = dma.hbm_to_vmem [thread:$0]  (!%p985_p0), %s231_s19, 128, %s233_s18, %s220_s2, %s873_s22, %s873_s22, %s874_s25  }
  0x29   : > { %634 = dma.hbm_to_vmem [thread:$0]  (!%p985_p0), %s274_s9, 128, %s276_s27, %s243_s30, %s873_s22, %s873_s22, %s874_s25  }
  0x2a   : > { %297 = sbr.rel (%p998_p3) target bundleno = 90 (0x5a), region = 40  ;;  %s1017_s11 = sand.u32 (!%p998_p3), 1, %s855_s21  }
  0x2b   : > { %s1020_s15 = sshll.u32 (!%p998_p3), %s1017_s11, 3  ;;  %s300_s10 = scalar_lea.sflag (!%p998_p3), [#allocation4], %s1017_s11 }
  0x2c   : > { %s303_s14 = scalar_lea.vmem (!%p998_p3), [#allocation3], %s1020_s15 }
  0x2f   : > { %838 = dma.done.wait (%p961_p8), %s300_s10, 128  }
  0x30   : > { %840 = vsyncadd (%p961_p8), %s300_s10, 4294967168  ;;  %s309_s2 = sand.u32 1, %s941_s0   ;;  %s605_s22 = sshll.u32 %s1017_s11, 1 }
  0x31   : > { %s310_s25 = scalar_lea.sflag [#allocation7], %s309_s2  ;;  %s1030_s27 = scalar_lea.vmem [#allocation6], %s605_s22 }
  0x32   : > { %842 = dma.done.wait (%p961_p8), %s310_s25, 160  }
  0x33   : > { %844 = vsyncadd (%p961_p8), %s310_s25, 4294967136  ;;  %p368_p4 = scmp.lt.s32.totalorder %s863_s23, 1  ;;  %s375_s8 = sld [smem:[#allocation2]]  ;;  %v376_v0 = vld [vmem:[%s303_s14] sm:$0x3]  ;;  %vm388_vm0 = vcmask 1041408  }
  0x34   : > { %v377_v1 = vld [vmem:[%s303_s14 + $0x2] sm:$0x3]  ;;  %v378_v2 = vld [vmem:[%s303_s14 + $0x4] sm:$0x3]  ;;  %s323_s17 = scalar_lea.vmem [#allocation8], %s1020_s15  ;;  %s616_s6 = sshll.u32 %s863_s23, 3 }
  0x35   : > { %s369_s9 = scalar_select %p368_p4, %s863_s23, 1  ;;  %v380_v3 = vld [vmem:[%s323_s17] sm:$0x3]  ;;  %v381_v4 = vld [vmem:[%s323_s17 + $0x2] sm:$0x3] }
  0x36   : > { %v382_v6 = vld [vmem:[%s323_s17 + $0x4] sm:$0x3]  ;;  %v384_v7 = vmul.f32 %v380_v3, %v376_v0  ;;  %v385_v8 = vmul.f32 %v381_v4, %v377_v1  ;;  %v379_v14 = vld [vmem:[%s303_s14 + $0x6] sm:$0x3]  ;;  %v383_v15 = vld [vmem:[%s323_s17 + $0x6] sm:$0x3]  ;;  %s441_s19 = scalar_lea.hbm %s1091_s5, %s616_s6 }
  0x37   : > { %s608_s13 = sshll.u32 %s369_s9, 1  ;;  %v386_v10 = vmul.f32 %v382_v6, %v378_v2  ;;  %v387_v17 = vmul.f32 %v383_v15, %v379_v14  ;;  %v396_v27 = vld [vmem:[%s1030_s27] sm:$0x3]  ;;  %s367_s26 = scalar_lea.vmem [#allocation9], %s1020_s15 }
  0x38   : > { %s374_s0 = scalar_lea.vmem %s1090_s4, %s608_s13  ;;  %v389_v11 = vsel %vm388_vm0, %v384_v7, 0.0  ;;  %v390_v12 = vsel %vm388_vm0, %v385_v8, 0.0  ;;  %s442_s28 = sshll.u32 %s367_s26, 4  ;;  %s443_s28 = int_to_ptr.vmem [resolvable:$true] %s442_s28 }
  0x39   : > { %v399_v5 = vstv %s375_s8  ;;  %v398_v9 = vld [vmem:[%s374_s0] sm:$0x3]  ;;  %v391_v16 = vadd.f32 %v390_v12, %v389_v11  ;;  %v392_v18 = vsel %vm388_vm0, %v386_v10, 0.0  ;;  %v394_v21 = vsel %vm388_vm0, %v387_v17, 0.0  ;;  %s444_s29 = sshll.u32 %s441_s19, 4  ;;  %s429_s23 = scalar_lea.sflag [#allocation5], %s1017_s11  ;;  %s445_s29 = int_to_ptr.hbm [resolvable:$true] %s444_s29 }
  0x3a   : > { %v400_v13 = vadd.f32 %v399_v5, %v398_v9  ;;  %s799_s10 = sshra.s32 %s445_s29, 4  ;;  %s805_s22 = scalar_lea.hbm %s1091_s5, 16  ;;  %s800_s10 = int_to_ptr.hbm [resolvable:$true] %s799_s10 }
  0x3b   : > { %v393_v19 = vadd.f32 %v392_v18, %v391_v16  ;;  %s801_s14 = scalar_lea.hbm %s800_s10, 8  ;;  %p806_p8 = scmp.lt.s32.totalorder %s800_s10, %s1091_s5 }
  0x3c   : > { %693 = vrcp.f32 %v400_v13  ;;  %vm406_vm1 = vweird.f32 %v400_v13  ;;  %v412_v23 = vand.u32 2147483648, %v400_v13  ;;  %v410_v26 = vand.u32 2147483647, %v400_v13  ;;  %p802_p5 = scmp.ne.s32.totalorder %s800_s10, %s801_s14  ;;  %p807_p10 = scmp.lt.s32.totalorder %s805_s22, %s801_s14 }
  0x3d   : > { %v395_v24 = vadd.f32 %v394_v21, %v393_v19 }
  0x3e   : > { %v413_v29 = vor.u32 1.1754944e-38, %v412_v23  ;;  %vm411_vm4 = vcmp.eq.f32.partialorder %v410_v26, 8.507059e+37  ;;  %p803_p6 = pnand %p802_p5, %p965_p9  ;;  %p808_p13 = por %p807_p10, %p806_p8 }
  0x3f   : > { %v397_v30 = vsub.f32 %v396_v27, %v395_v24 }
  0x40   : > { %p804_p7 = pneg %p803_p6 }
  0x42   : > { %v694_v20 = vpop.eup %693  ;;  %p809_p0 = pnand %p808_p13, %p804_p7 }
  0x43   : > { %v402_v22 = vmul.f32 %v694_v20, %v400_v13  ;;  %vm407_vm2 = vweird.f32 %v694_v20 }
  0x44   : > { %vm408_vm3 = vmor %vm406_vm1, %vm407_vm2 }
  0x45   : > { %v403_v25 = vsub.f32 1.0, %v402_v22 }
  0x47   : > { %v404_v28 = vmul.f32 %v694_v20, %v403_v25 }
  0x49   : > { %v405_v31 = vadd.f32 %v694_v20, %v404_v28 }
  0x4b   : > { %v409_v32 = vsel %vm408_vm3, %v694_v20, %v405_v31 }
  0x4c   : > { %v414_v33 = vsel %vm411_vm4, %v413_v29, %v409_v32 }
  0x4d   : > { %v415_v34 = vmul.f32 %v414_v33, %v397_v30 }
  0x4f   : > { %v416_v35 = vmul.f32 %v415_v34, %v380_v3  ;;  %v417_v36 = vmul.f32 %v415_v34, %v381_v4  ;;  %v418_v37 = vmul.f32 %v415_v34, %v382_v6  ;;  %v419_v38 = vmul.f32 %v415_v34, %v383_v15 }
  0x51   : > { %v420_v39 = vadd.f32 %v416_v35, %v376_v0  ;;  %v421_v40 = vadd.f32 %v417_v36, %v377_v1  ;;  %v422_v41 = vadd.f32 %v418_v37, %v378_v2  ;;  %v423_v42 = vadd.f32 %v419_v38, %v379_v14 }
  0x53   : > { %424 = vst [vmem:[%s367_s26] sm:$0x3] %v420_v39 }
  0x54   : > { %425 = vst [vmem:[%s367_s26 + $0x2] sm:$0x3] %v421_v40 }
  0x55   : > { %426 = vst [vmem:[%s367_s26 + $0x4] sm:$0x3] %v422_v41 }
  0x56   : > { %427 = vst [vmem:[%s367_s26 + $0x6] sm:$0x3] %v423_v42 }
  0x57   : > { %812 = shalt.err (!%p809_p0)
}
  0x58   : > { %s875_s11 = smov 32   ;;  %s876_s8 = smov 2  }
  0x59   : > { %623 = dma.vmem_to_hbm [thread:$0]  (%p965_p9), %s443_s28, 128, %s445_s29, %s429_s23, %s875_s11, %s875_s11, %s876_s8  }
  0x5a PF: > { %s1111_s13 = sld [smem:[#allocation14_spill]]  ;;  %s459_s30 = sand.u32 1, %s851_s20  }
  0x5b   : > { %p636_p1 = pnand %p594_p12, %p972_p11  ;;  %s460_s16 = scalar_lea.sflag [#allocation5], %s459_s30 }
  0x5d   : > { %p637_p2 = pneg %p636_p1 }
  0x5f   : > { %846 = dma.done.wait (%p637_p2), %s460_s16, 128  }
  0x60   : > { %848 = vsyncadd (%p637_p2), %s460_s16, 4294967168  ;;  %s25_s25 = sadd.s32 1, %s1111_s13   ;;  %s1112_s0 = sld [smem:[#allocation13_spill]] }
  0x61   : > { %p22_p3 = scmp.ge.s32.totalorder %s25_s25, 4   ;;  %s1113_s22 = sld [smem:[#allocation16_spill]] }
  0x62   : > { %s1114_s7 = sld [smem:[#allocation15_spill]]  ;;  %s1115_s20 = smov %s855_s21 }
  0x63   : > { %s1117_s23 = smov %s867_s24 }
  0x64   :  { %24 = sbr.rel (!%p22_p3) target bundleno = 11 (0xb), region = 112 }
  0x66   : > { %s1116_s21 = smov %s1112_s0 }
  0x68   : > { %s1118_s24 = smov %s1114_s7 }
  0x69   :  { %466 = vsyncpa [#allocation4], 1 }
  0x6a   :  { %468 = vsyncpa [#allocation4 + $0x1], 1 }
  0x6b   :  { %469 = vsyncpa [#allocation7], 1 }
  0x6c   :  { %471 = vsyncpa [#allocation7 + $0x1], 1 }
  0x6d   :  { %472 = vsyncpa [#allocation5], 1 }
  0x6e   :  { %474 = vsyncpa [#allocation5 + $0x1], 1 }

</bundles_post_ra>
